<compile_context>
chip_gen: v5e
topology: v5e:2x2
jax: 0.10.0
libtpu: 0.0.40
codegen_flags: <defaults>
</compile_context>

<pallas_src>
import functools

import jax
import jax.numpy as jnp
import numpy as np
from jax import lax
from jax.experimental import pallas as pl
from jax.experimental.pallas import tpu as pltpu


# ----------------------------- fused kernel -----------------------------

def _channel_split(c):
    cs = c // 2              # static channels
    dyn = c - cs
    fd = dyn // 2            # forward-shifted dynamic channels
    return cs, fd


def _tsconv_relu(x, w_ref, b_ref, k_fwd, k_bwd, k_up, k_dn, *, wp, cs, fd):
    # x:     (Cin, L) f32, L = B_blk*Hp*Wp flattened on lanes (image-major)
    # w_ref: (3, Cout, Cin) per-H-tap weight matrices,  b_ref: (Cout, 1)
    # k_*:   (1, L) 0/1 masks zeroing roll wrap-around at W / H / image boundaries
    c, L = x.shape

    # W time-shift: full-width lane rolls + per-channel select (no sublane slicing).
    xf = pltpu.roll(x, shift=1, axis=1) * k_fwd            # x[w-1]
    xb = pltpu.roll(x, shift=L - 1, axis=1) * k_bwd        # x[w+1]  (circular roll by -1)
    ch = lax.broadcasted_iota(jnp.int32, (c, L), 0)
    xs = jnp.where(ch < cs, x, jnp.where(ch < cs + fd, xf, xb))

    # (3,1) conv with padding (1,0): H-taps as lane rolls by +/-Wp, three accumulating
    # MXU matmuls (no (3*Cin, L) im2col concat).
    up = pltpu.roll(xs, shift=wp, axis=1) * k_up            # x[h-1]
    dn = pltpu.roll(xs, shift=L - wp, axis=1) * k_dn        # x[h+1]
    y = (jnp.dot(w_ref[0], up, preferred_element_type=jnp.float32)
         + jnp.dot(w_ref[1], xs, preferred_element_type=jnp.float32)
         + jnp.dot(w_ref[2], dn, preferred_element_type=jnp.float32)
         + b_ref[...])
    return jnp.maximum(y, 0.0)                              # fused ReLU


def _fused_kernel(x_ref, keep_ref, w1_ref, b1_ref, w2_ref, b2_ref, o_ref,
                  *, wp, split1, split2):
    # x_ref: (1, 4, Cin, L) -- the four 2x2-window corners of B_blk images.
    # MaxPool2d(2): pure VPU max of the four corner views.
    p = jnp.maximum(jnp.maximum(x_ref[0, 0], x_ref[0, 1]),
                    jnp.maximum(x_ref[0, 2], x_ref[0, 3]))
    k_fwd, k_bwd, k_up, k_dn = keep_ref[0], keep_ref[1], keep_ref[2], keep_ref[3]
    h1 = _tsconv_relu(p, w1_ref, b1_ref, k_fwd, k_bwd, k_up, k_dn,
                      wp=wp, cs=split1[0], fd=split1[1])
    h2 = _tsconv_relu(h1, w2_ref, b2_ref, k_fwd, k_bwd, k_up, k_dn,
                      wp=wp, cs=split2[0], fd=split2[1])
    o_ref[0] = h2.astype(o_ref.dtype)


# ----------------------------- glue / setup -----------------------------

def make_keep_masks(hp, wp, b_blk, dtype=jnp.float32):
    s = np.arange(hp * wp)
    keep = np.ones((4, hp * wp), np.float32)
    keep[0, s % wp == 0] = 0.0           # forward W-shift: zero at w == 0
    keep[1, s % wp == wp - 1] = 0.0      # backward W-shift: zero at w == Wp-1
    keep[2, s < wp] = 0.0                # up tap (x[h-1]): zero at h == 0
    keep[3, s >= (hp - 1) * wp] = 0.0    # down tap (x[h+1]): zero at h == Hp-1
    keep = np.tile(keep, (1, b_blk))     # per-image tiling also kills cross-image wrap
    return jnp.asarray(keep.reshape(4, 1, hp * wp * b_blk), dtype)


def to_kernel_params(w_oihw, b):
    # (Cout, Cin, 3, 1), (Cout,) -> (3, Cout, Cin) per-H-tap matrices, (Cout, 1)
    w_taps = jnp.transpose(w_oihw[:, :, :, 0], (2, 0, 1))
    return w_taps, b.reshape(-1, 1)


def _pick_bblk(n, s):
    # lanes per step = b*s: need >=128 (unmasked stores), prefer >=512;
    # keep >=2 grid steps (v7x: 2 TensorCores) when batch allows it.
    min_b = max(1, -(-128 // s))
    if n <= min_b:
        return n
    pref_b = max(min_b, -(-512 // s))
    return min(pref_b, max(min_b, n // 2))


def downsample_tsc(x_nchw, params):
    # x_nchw: (N, Cin, H, W); params: ((w1,b1), (w2,b2)) in kernel layout.
    n, cin, h, w = x_nchw.shape
    assert h % 2 == 0 and w % 2 == 0, "MaxPool2d(2) glue assumes even H and W"
    hp, wp = h // 2, w // 2
    s = hp * wp

    (w1, b1), (w2, b2) = params
    cout1, cout2 = w1.shape[1], w2.shape[1]

    b_blk = _pick_bblk(n, s)
    nb = -(-n // b_blk)
    n_pad = nb * b_blk
    L = b_blk * s

    # 2x2 pooling corners -> one stacked lane-dense array (nb, 4, Cin, B_blk*S),
    # lanes ordered [image, h, w]; single DMA per grid step.
    xr = x_nchw.reshape(n, cin, hp, 2, wp, 2)
    corners = jnp.stack([xr[:, :, :, i, :, j] for i in (0, 1) for j in (0, 1)], axis=1)
    corners = corners.reshape(n, 4, cin, s)
    if n_pad != n:
        corners = jnp.pad(corners, ((0, n_pad - n), (0, 0), (0, 0), (0, 0)))
    corners = (corners.reshape(nb, b_blk, 4, cin, s)
                      .transpose(0, 2, 3, 1, 4)
                      .reshape(nb, 4, cin, L))

    keep = make_keep_masks(hp, wp, b_blk)

    kern = functools.partial(_fused_kernel, wp=wp,
                             split1=_channel_split(cin),
                             split2=_channel_split(cout1))

    out = pl.pallas_call(
        kern,
        out_shape=jax.ShapeDtypeStruct((nb, cout2, L), x_nchw.dtype),
        grid=(nb,),
        in_specs=[
            pl.BlockSpec((1, 4, cin, L), lambda i: (i, 0, 0, 0)),
            pl.BlockSpec((4, 1, L), lambda i: (0, 0, 0)),
            pl.BlockSpec(w1.shape, lambda i: (0, 0, 0)),
            pl.BlockSpec(b1.shape, lambda i: (0, 0)),
            pl.BlockSpec(w2.shape, lambda i: (0, 0, 0)),
            pl.BlockSpec(b2.shape, lambda i: (0, 0)),
        ],
        out_specs=pl.BlockSpec((1, cout2, L), lambda i: (i, 0, 0)),
        compiler_params=pltpu.CompilerParams(
            dimension_semantics=("parallel",),
            vmem_limit_bytes=32 * 1024 * 1024,
        ),
    )(corners, keep, w1, b1, w2, b2)

    # (nb, Cout, B_blk*S) -> (N, Cout, Hp, Wp)
    out = (out.reshape(nb, cout2, b_blk, s)
              .transpose(0, 2, 1, 3)
              .reshape(n_pad, cout2, hp, wp))
    return out[:n]


def init_params(key, in_channels, out_channels):
    mid = out_channels  # DoubleTSConv default: mid_channels = out_channels
    k1, k2, k3, k4 = jax.random.split(key, 4)

    def conv_init(kw, kb, cin, cout):
        fan_in = cin * 3 * 1
        bound = 1.0 / np.sqrt(fan_in)
        w = jax.random.uniform(kw, (cout, cin, 3, 1), jnp.float32, -bound, bound)
        b = jax.random.uniform(kb, (cout,), jnp.float32, -bound, bound)
        return w, b

    w1, b1 = conv_init(k1, k2, in_channels, mid)
    w2, b2 = conv_init(k3, k4, mid, out_channels)
    return (w1, b1), (w2, b2)


# ----------------------------- pure-JAX reference -----------------------------

def _ref_tsconv(x, w, b):
    # x: NCHW, w: (Cout, Cin, 3, 1), b: (Cout,)
    n, c, h, ww = x.shape
    cs = c // 2
    dyn = c - cs
    fd = dyn // 2
    static = x[:, :cs]
    fwd = x[:, cs:cs + fd]
    bwd = x[:, cs + fd:]
    zf = jnp.zeros_like(fwd[:, :, :, :1])
    zb = jnp.zeros_like(bwd[:, :, :, :1])
    fwd_s = jnp.concatenate([zf, fwd[:, :, :, :-1]], axis=3)
    bwd_s = jnp.concatenate([bwd[:, :, :, 1:], zb], axis=3)
    xs = jnp.concatenate([static, fwd_s, bwd_s], axis=1)
    xpad = jnp.pad(xs, ((0, 0), (0, 0), (1, 1), (0, 0)))
    out = jnp.zeros((n, w.shape[0], h, ww), jnp.float32)
    for kh in range(3):
        out = out + jnp.einsum('oi,nihw->nohw', w[:, :, kh, 0],
                               xpad[:, :, kh:kh + h, :])
    return out + b[None, :, None, None]


def _ref_downsample(x, raw_params):
    n, c, h, w = x.shape
    hpool = x.reshape(n, c, h // 2, 2, w // 2, 2).max(axis=(3, 5))
    for (wt, bt) in raw_params:
        hpool = jnp.maximum(_ref_tsconv(hpool, wt, bt), 0.0)
    return hpool


# ------------------------------------- main -------------------------------------

if __name__ == "__main__":
    key = jax.random.PRNGKey(0)
    kx, kp = jax.random.split(key)

    N, Cin, H, W = 2, 4, 16, 16
    Cout = 8

    x = jax.random.normal(kx, (N, Cin, H, W), jnp.float32)
    (w1, b1), (w2, b2) = init_params(kp, Cin, Cout)

    kernel_params = (to_kernel_params(w1, b1), to_kernel_params(w2, b2))

    out = jax.jit(downsample_tsc)(x, kernel_params)
    out = jax.block_until_ready(out)

    ref = _ref_downsample(x, ((w1, b1), (w2, b2)))
    assert out.shape == (N, Cout, H // 2, W // 2), out.shape
    np.testing.assert_allclose(np.asarray(out), np.asarray(ref),
                               rtol=1e-5, atol=1e-5)
    print("KERNEL_OK")
</pallas_src>

<mosaic_0001>
module attributes {stable_mosaic.version = 11 : i64} {
  func.func @_fused_kernel(%arg0: i32, %arg1: memref<1x4x4x128xf32, #tpu.memory_space<vmem>>, %arg2: memref<4x1x128xf32, #tpu.memory_space<vmem>>, %arg3: memref<3x8x4xf32, #tpu.memory_space<vmem>>, %arg4: memref<8x1xf32, #tpu.memory_space<vmem>>, %arg5: memref<3x8x8xf32, #tpu.memory_space<vmem>>, %arg6: memref<8x1xf32, #tpu.memory_space<vmem>>, %arg7: memref<1x8x128xf32, #tpu.memory_space<vmem>>) attributes {dimension_semantics = [#tpu.dimension_semantics<parallel>], iteration_bounds = array<i64: 1>, scalar_prefetch = 0 : i64, scratch_operands = 0 : i64, tpu.core_type = #tpu.core_type<tc>, window_params = [{transform_indices = @transform_0, window_bounds = array<i64: 1, 4, 4, 128>}, {pipeline_mode = #tpu.pipeline_mode<synchronous>, transform_indices = @transform_1, window_bounds = array<i64: 4, 1, 128>}, {pipeline_mode = #tpu.pipeline_mode<synchronous>, transform_indices = @transform_2, window_bounds = array<i64: 3, 8, 4>}, {pipeline_mode = #tpu.pipeline_mode<synchronous>, transform_indices = @transform_3, window_bounds = array<i64: 8, 1>}, {pipeline_mode = #tpu.pipeline_mode<synchronous>, transform_indices = @transform_4, window_bounds = array<i64: 3, 8, 8>}, {pipeline_mode = #tpu.pipeline_mode<synchronous>, transform_indices = @transform_5, window_bounds = array<i64: 8, 1>}, {transform_indices = @transform_6, window_bounds = array<i64: 1, 8, 128>}]} {
    %c0 = arith.constant 0 : index
    %c0_0 = arith.constant 0 : index
    %c0_1 = arith.constant 0 : index
    %c0_2 = arith.constant 0 : index
    %0 = vector.load %arg1[%c0, %c0_0, %c0_1, %c0_2] : memref<1x4x4x128xf32, #tpu.memory_space<vmem>>, vector<1x1x4x128xf32>
    %1 = vector.shape_cast %0 : vector<1x1x4x128xf32> to vector<4x128xf32>
    %c0_3 = arith.constant 0 : index
    %c1 = arith.constant 1 : index
    %c0_4 = arith.constant 0 : index
    %c0_5 = arith.constant 0 : index
    %2 = vector.load %arg1[%c0_3, %c1, %c0_4, %c0_5] : memref<1x4x4x128xf32, #tpu.memory_space<vmem>>, vector<1x1x4x128xf32>
    %3 = vector.shape_cast %2 : vector<1x1x4x128xf32> to vector<4x128xf32>
    %4 = arith.maximumf %1, %3 : vector<4x128xf32>
    %c0_6 = arith.constant 0 : index
    %c2 = arith.constant 2 : index
    %c0_7 = arith.constant 0 : index
    %c0_8 = arith.constant 0 : index
    %5 = vector.load %arg1[%c0_6, %c2, %c0_7, %c0_8] : memref<1x4x4x128xf32, #tpu.memory_space<vmem>>, vector<1x1x4x128xf32>
    %6 = vector.shape_cast %5 : vector<1x1x4x128xf32> to vector<4x128xf32>
    %c0_9 = arith.constant 0 : index
    %c3 = arith.constant 3 : index
    %c0_10 = arith.constant 0 : index
    %c0_11 = arith.constant 0 : index
    %7 = vector.load %arg1[%c0_9, %c3, %c0_10, %c0_11] : memref<1x4x4x128xf32, #tpu.memory_space<vmem>>, vector<1x1x4x128xf32>
    %8 = vector.shape_cast %7 : vector<1x1x4x128xf32> to vector<4x128xf32>
    %9 = arith.maximumf %6, %8 : vector<4x128xf32>
    %10 = arith.maximumf %4, %9 : vector<4x128xf32>
    %c0_12 = arith.constant 0 : index
    %c0_13 = arith.constant 0 : index
    %c0_14 = arith.constant 0 : index
    %11 = vector.load %arg2[%c0_12, %c0_13, %c0_14] : memref<4x1x128xf32, #tpu.memory_space<vmem>>, vector<1x1x128xf32>
    %12 = vector.shape_cast %11 : vector<1x1x128xf32> to vector<1x128xf32>
    %c1_15 = arith.constant 1 : index
    %c0_16 = arith.constant 0 : index
    %c0_17 = arith.constant 0 : index
    %13 = vector.load %arg2[%c1_15, %c0_16, %c0_17] : memref<4x1x128xf32, #tpu.memory_space<vmem>>, vector<1x1x128xf32>
    %14 = vector.shape_cast %13 : vector<1x1x128xf32> to vector<1x128xf32>
    %c2_18 = arith.constant 2 : index
    %c0_19 = arith.constant 0 : index
    %c0_20 = arith.constant 0 : index
    %15 = vector.load %arg2[%c2_18, %c0_19, %c0_20] : memref<4x1x128xf32, #tpu.memory_space<vmem>>, vector<1x1x128xf32>
    %16 = vector.shape_cast %15 : vector<1x1x128xf32> to vector<1x128xf32>
    %c3_21 = arith.constant 3 : index
    %c0_22 = arith.constant 0 : index
    %c0_23 = arith.constant 0 : index
    %17 = vector.load %arg2[%c3_21, %c0_22, %c0_23] : memref<4x1x128xf32, #tpu.memory_space<vmem>>, vector<1x1x128xf32>
    %18 = vector.shape_cast %17 : vector<1x1x128xf32> to vector<1x128xf32>
    %c1_i32 = arith.constant 1 : i32
    %19 = tpu.dynamic_rotate %10 by %c1_i32 dim 1 : vector<4x128xf32>, i32 -> vector<4x128xf32>
    %20 = vector.broadcast %12 : vector<1x128xf32> to vector<4x128xf32>
    %21 = arith.mulf %19, %20 : vector<4x128xf32>
    %c127_i32 = arith.constant 127 : i32
    %22 = tpu.dynamic_rotate %10 by %c127_i32 dim 1 : vector<4x128xf32>, i32 -> vector<4x128xf32>
    %23 = vector.broadcast %14 : vector<1x128xf32> to vector<4x128xf32>
    %24 = arith.mulf %22, %23 : vector<4x128xf32>
    %25 = tpu.iota {dimensions = array<i32: 0>} : vector<4x128xi32>
    %c2_i32 = arith.constant 2 : i32
    %26 = vector.broadcast %c2_i32 : i32 to vector<4x128xi32>
    %27 = arith.cmpi slt, %25, %26 : vector<4x128xi32>
    %c3_i32 = arith.constant 3 : i32
    %28 = vector.broadcast %c3_i32 : i32 to vector<4x128xi32>
    %29 = arith.cmpi slt, %25, %28 : vector<4x128xi32>
    %30 = arith.select %29, %21, %24 : vector<4x128xi1>, vector<4x128xf32>
    %31 = arith.select %27, %10, %30 : vector<4x128xi1>, vector<4x128xf32>
    %c8_i32 = arith.constant 8 : i32
    %32 = tpu.dynamic_rotate %31 by %c8_i32 dim 1 : vector<4x128xf32>, i32 -> vector<4x128xf32>
    %33 = vector.broadcast %16 : vector<1x128xf32> to vector<4x128xf32>
    %34 = arith.mulf %32, %33 : vector<4x128xf32>
    %c120_i32 = arith.constant 120 : i32
    %35 = tpu.dynamic_rotate %31 by %c120_i32 dim 1 : vector<4x128xf32>, i32 -> vector<4x128xf32>
    %36 = vector.broadcast %18 : vector<1x128xf32> to vector<4x128xf32>
    %37 = arith.mulf %35, %36 : vector<4x128xf32>
    %c0_24 = arith.constant 0 : index
    %c0_25 = arith.constant 0 : index
    %c0_26 = arith.constant 0 : index
    %38 = vector.load %arg3[%c0_24, %c0_25, %c0_26] : memref<3x8x4xf32, #tpu.memory_space<vmem>>, vector<1x8x4xf32>
    %39 = vector.shape_cast %38 : vector<1x8x4xf32> to vector<8x4xf32>
    %cst = arith.constant dense<0.000000e+00> : vector<8x128xf32>
    %40 = tpu.matmul %39, %34, %cst {dimension_numbers = #tpu.dot_dimension_numbers<[1], [0], [0], [1], [0, 0, 1, 1], [], []>} : vector<8x4xf32>, vector<4x128xf32>, vector<8x128xf32> -> vector<8x128xf32>
    %c1_27 = arith.constant 1 : index
    %c0_28 = arith.constant 0 : index
    %c0_29 = arith.constant 0 : index
    %41 = vector.load %arg3[%c1_27, %c0_28, %c0_29] : memref<3x8x4xf32, #tpu.memory_space<vmem>>, vector<1x8x4xf32>
    %42 = vector.shape_cast %41 : vector<1x8x4xf32> to vector<8x4xf32>
    %cst_30 = arith.constant dense<0.000000e+00> : vector<8x128xf32>
    %43 = tpu.matmul %42, %31, %cst_30 {dimension_numbers = #tpu.dot_dimension_numbers<[1], [0], [0], [1], [0, 0, 1, 1], [], []>} : vector<8x4xf32>, vector<4x128xf32>, vector<8x128xf32> -> vector<8x128xf32>
    %44 = arith.addf %40, %43 : vector<8x128xf32>
    %c2_31 = arith.constant 2 : index
    %c0_32 = arith.constant 0 : index
    %c0_33 = arith.constant 0 : index
    %45 = vector.load %arg3[%c2_31, %c0_32, %c0_33] : memref<3x8x4xf32, #tpu.memory_space<vmem>>, vector<1x8x4xf32>
    %46 = vector.shape_cast %45 : vector<1x8x4xf32> to vector<8x4xf32>
    %cst_34 = arith.constant dense<0.000000e+00> : vector<8x128xf32>
    %47 = tpu.matmul %46, %37, %cst_34 {dimension_numbers = #tpu.dot_dimension_numbers<[1], [0], [0], [1], [0, 0, 1, 1], [], []>} : vector<8x4xf32>, vector<4x128xf32>, vector<8x128xf32> -> vector<8x128xf32>
    %48 = arith.addf %44, %47 : vector<8x128xf32>
    %c0_35 = arith.constant 0 : index
    %c0_36 = arith.constant 0 : index
    %49 = vector.load %arg4[%c0_35, %c0_36] : memref<8x1xf32, #tpu.memory_space<vmem>>, vector<8x1xf32>
    %50 = vector.broadcast %49 : vector<8x1xf32> to vector<8x128xf32>
    %51 = arith.addf %48, %50 : vector<8x128xf32>
    %cst_37 = arith.constant 0.000000e+00 : f32
    %52 = vector.broadcast %cst_37 : f32 to vector<8x128xf32>
    %53 = arith.maximumf %51, %52 : vector<8x128xf32>
    %c1_i32_38 = arith.constant 1 : i32
    %54 = tpu.dynamic_rotate %53 by %c1_i32_38 dim 1 : vector<8x128xf32>, i32 -> vector<8x128xf32>
    %55 = vector.broadcast %12 : vector<1x128xf32> to vector<8x128xf32>
    %56 = arith.mulf %54, %55 : vector<8x128xf32>
    %c127_i32_39 = arith.constant 127 : i32
    %57 = tpu.dynamic_rotate %53 by %c127_i32_39 dim 1 : vector<8x128xf32>, i32 -> vector<8x128xf32>
    %58 = vector.broadcast %14 : vector<1x128xf32> to vector<8x128xf32>
    %59 = arith.mulf %57, %58 : vector<8x128xf32>
    %60 = tpu.iota {dimensions = array<i32: 0>} : vector<8x128xi32>
    %c4_i32 = arith.constant 4 : i32
    %61 = vector.broadcast %c4_i32 : i32 to vector<8x128xi32>
    %62 = arith.cmpi slt, %60, %61 : vector<8x128xi32>
    %c6_i32 = arith.constant 6 : i32
    %63 = vector.broadcast %c6_i32 : i32 to vector<8x128xi32>
    %64 = arith.cmpi slt, %60, %63 : vector<8x128xi32>
    %65 = arith.select %64, %56, %59 : vector<8x128xi1>, vector<8x128xf32>
    %66 = arith.select %62, %53, %65 : vector<8x128xi1>, vector<8x128xf32>
    %c8_i32_40 = arith.constant 8 : i32
    %67 = tpu.dynamic_rotate %66 by %c8_i32_40 dim 1 : vector<8x128xf32>, i32 -> vector<8x128xf32>
    %68 = vector.broadcast %16 : vector<1x128xf32> to vector<8x128xf32>
    %69 = arith.mulf %67, %68 : vector<8x128xf32>
    %c120_i32_41 = arith.constant 120 : i32
    %70 = tpu.dynamic_rotate %66 by %c120_i32_41 dim 1 : vector<8x128xf32>, i32 -> vector<8x128xf32>
    %71 = vector.broadcast %18 : vector<1x128xf32> to vector<8x128xf32>
    %72 = arith.mulf %70, %71 : vector<8x128xf32>
    %c0_42 = arith.constant 0 : index
    %c0_43 = arith.constant 0 : index
    %c0_44 = arith.constant 0 : index
    %73 = vector.load %arg5[%c0_42, %c0_43, %c0_44] : memref<3x8x8xf32, #tpu.memory_space<vmem>>, vector<1x8x8xf32>
    %74 = vector.shape_cast %73 : vector<1x8x8xf32> to vector<8x8xf32>
    %cst_45 = arith.constant dense<0.000000e+00> : vector<8x128xf32>
    %75 = tpu.matmul %74, %69, %cst_45 {dimension_numbers = #tpu.dot_dimension_numbers<[1], [0], [0], [1], [0, 0, 1, 1], [], []>} : vector<8x8xf32>, vector<8x128xf32>, vector<8x128xf32> -> vector<8x128xf32>
    %c1_46 = arith.constant 1 : index
    %c0_47 = arith.constant 0 : index
    %c0_48 = arith.constant 0 : index
    %76 = vector.load %arg5[%c1_46, %c0_47, %c0_48] : memref<3x8x8xf32, #tpu.memory_space<vmem>>, vector<1x8x8xf32>
    %77 = vector.shape_cast %76 : vector<1x8x8xf32> to vector<8x8xf32>
    %cst_49 = arith.constant dense<0.000000e+00> : vector<8x128xf32>
    %78 = tpu.matmul %77, %66, %cst_49 {dimension_numbers = #tpu.dot_dimension_numbers<[1], [0], [0], [1], [0, 0, 1, 1], [], []>} : vector<8x8xf32>, vector<8x128xf32>, vector<8x128xf32> -> vector<8x128xf32>
    %79 = arith.addf %75, %78 : vector<8x128xf32>
    %c2_50 = arith.constant 2 : index
    %c0_51 = arith.constant 0 : index
    %c0_52 = arith.constant 0 : index
    %80 = vector.load %arg5[%c2_50, %c0_51, %c0_52] : memref<3x8x8xf32, #tpu.memory_space<vmem>>, vector<1x8x8xf32>
    %81 = vector.shape_cast %80 : vector<1x8x8xf32> to vector<8x8xf32>
    %cst_53 = arith.constant dense<0.000000e+00> : vector<8x128xf32>
    %82 = tpu.matmul %81, %72, %cst_53 {dimension_numbers = #tpu.dot_dimension_numbers<[1], [0], [0], [1], [0, 0, 1, 1], [], []>} : vector<8x8xf32>, vector<8x128xf32>, vector<8x128xf32> -> vector<8x128xf32>
    %83 = arith.addf %79, %82 : vector<8x128xf32>
    %c0_54 = arith.constant 0 : index
    %c0_55 = arith.constant 0 : index
    %84 = vector.load %arg6[%c0_54, %c0_55] : memref<8x1xf32, #tpu.memory_space<vmem>>, vector<8x1xf32>
    %85 = vector.broadcast %84 : vector<8x1xf32> to vector<8x128xf32>
    %86 = arith.addf %83, %85 : vector<8x128xf32>
    %cst_56 = arith.constant 0.000000e+00 : f32
    %87 = vector.broadcast %cst_56 : f32 to vector<8x128xf32>
    %88 = arith.maximumf %86, %87 : vector<8x128xf32>
    %c0_57 = arith.constant 0 : index
    %c0_58 = arith.constant 0 : index
    %c0_59 = arith.constant 0 : index
    %89 = vector.load %arg7[%c0_57, %c0_58, %c0_59] : memref<1x8x128xf32, #tpu.memory_space<vmem>>, vector<1x8x128xf32>
    %90 = vector.shape_cast %89 : vector<1x8x128xf32> to vector<8x128xf32>
    %91 = vector.shape_cast %88 : vector<8x128xf32> to vector<1x8x128xf32>
    tpu.vector_store %arg7[%c0_57, %c0_58, %c0_59], %91 {strides = array<i32>} : memref<1x8x128xf32, #tpu.memory_space<vmem>>, vector<1x8x128xf32>,
    return
  }
  func.func @transform_0(%arg0: i32) -> (i32, i32, i32, i32) {
    %c0_i32 = arith.constant 0 : i32
    %c0_i32_0 = arith.constant 0 : i32
    %c0_i32_1 = arith.constant 0 : i32
    %c0_i32_2 = arith.constant 0 : i32
    return %arg0, %c0_i32, %c0_i32_0, %c0_i32_1 : i32, i32, i32, i32
  }
  func.func @transform_1(%arg0: i32) -> (i32, i32, i32) {
    %c0_i32 = arith.constant 0 : i32
    %c0_i32_0 = arith.constant 0 : i32
    %c0_i32_1 = arith.constant 0 : i32
    %c0_i32_2 = arith.constant 0 : i32
    return %c0_i32, %c0_i32_0, %c0_i32_1 : i32, i32, i32
  }
  func.func @transform_2(%arg0: i32) -> (i32, i32, i32) {
    %c0_i32 = arith.constant 0 : i32
    %c0_i32_0 = arith.constant 0 : i32
    %c0_i32_1 = arith.constant 0 : i32
    %c0_i32_2 = arith.constant 0 : i32
    return %c0_i32, %c0_i32_0, %c0_i32_1 : i32, i32, i32
  }
  func.func @transform_3(%arg0: i32) -> (i32, i32) {
    %c0_i32 = arith.constant 0 : i32
    %c0_i32_0 = arith.constant 0 : i32
    %c0_i32_1 = arith.constant 0 : i32
    return %c0_i32, %c0_i32_0 : i32, i32
  }
  func.func @transform_4(%arg0: i32) -> (i32, i32, i32) {
    %c0_i32 = arith.constant 0 : i32
    %c0_i32_0 = arith.constant 0 : i32
    %c0_i32_1 = arith.constant 0 : i32
    %c0_i32_2 = arith.constant 0 : i32
    return %c0_i32, %c0_i32_0, %c0_i32_1 : i32, i32, i32
  }
  func.func @transform_5(%arg0: i32) -> (i32, i32) {
    %c0_i32 = arith.constant 0 : i32
    %c0_i32_0 = arith.constant 0 : i32
    %c0_i32_1 = arith.constant 0 : i32
    return %c0_i32, %c0_i32_0 : i32, i32
  }
  func.func @transform_6(%arg0: i32) -> (i32, i32, i32) {
    %c0_i32 = arith.constant 0 : i32
    %c0_i32_0 = arith.constant 0 : i32
    %c0_i32_1 = arith.constant 0 : i32
    return %arg0, %c0_i32, %c0_i32_0 : i32, i32, i32
  }
}

</mosaic_0001>

<bundles_post_ra>
// kernel: downsample_tsc.1
= control target key start
LH: loop header
LB: loop body
LE: loop exit
PB: predicated region body
PF: predicated region fallthrough
CT: control target
= control target key end

     0   :  { %s299_s29 = smov 1   ;;  %s300_s30 = smov 127   ;;  %v52_v8 = vlaneseq  ;;  %vm77_vm2 = vcmask 1043456   ;;  %vm73_vm3 = vcmask 31744   ;;  %v303_v19 = vmov 0   ;;  %s404_s0 = inlined_call_operand.vmem [shape: f32[1,4,4,128], index: 0, kind: input, shape index: {}]   ;;  %s405_s1 = inlined_call_operand.vmem [shape: f32[4,1,128], index: 1, kind: input, shape index: {}]   ;;  %s406_s3 = inlined_call_operand.vmem [shape: f32[8,1], index: 3, kind: input, shape index: {}]   ;;  %s407_s2 = inlined_call_operand.vmem [shape: f32[3,8,4], index: 2, kind: input, shape index: {}]   ;;  %s408_s4 = inlined_call_operand.vmem [shape: f32[3,8,8], index: 4, kind: input, shape index: {}]   ;;  %s409_s5 = inlined_call_operand.vmem [shape: f32[8,1], index: 5, kind: input, shape index: {}]   ;;  %s410_s6 = inlined_call_operand.vmem [shape: f32[1,8,128], index: 6, kind: output, shape index: {}]  }
   0x1   :  { %v23_v0 = vld [vmem:[%s404_s0] sm:$0xf]  ;;  %v269_v1 = vld [vmem:[%s404_s0 + $0x4] sm:$0xf]  ;;  %v270_v2 = vld [vmem:[%s404_s0 + $0x8] sm:$0xf]  ;;  %293 = vset.pattern.permute.xlu2 %v303_v19  ;;  %294 = vset.pattern.permute.xlu0 %v303_v19 }
   0x2   :  { %v26_v3 = vmax.f32 %v23_v0, %v269_v1  ;;  %v271_v4 = vld [vmem:[%s404_s0 + $0xc] sm:$0xf]  ;;  %v53_v9 = vshrl.u32 %v52_v8, 7  ;;  %v295_v10 = vld [vmem:[%s405_s1] ss:$0 sm:$0xff]  ;;  %s301_s0 = smov 120  }
   0x3   :  { %v31_v5 = vmax.f32 %v270_v2, %v271_v4  ;;  %v296_v11 = vld [vmem:[%s405_s1 + $0x1] ss:$0 sm:$0xff]  ;;  %s302_s11 = smov 8   ;;  %v275_v17 = vld [vmem:[%s407_s2 + $0x8] sm:$0xff]  ;;  %v297_v20 = vld [vmem:[%s405_s1 + $0x3] ss:$0 sm:$0xff] }
   0x4   :  { %vm55_vm0 = vcmp.lt.s32.totalorder %v53_v9, 3  ;;  %vm54_vm1 = vcmp.lt.s32.totalorder %v53_v9, 2  ;;  %v156_v18 = vld [vmem:[%s406_s3] sm:$0xff]  ;;  %v280_v23 = vld [vmem:[%s407_s2 + $0x10] sm:$0xff]  ;;  %vm171_vm4 = vcmp.lt.s32.totalorder %v53_v9, 6  ;;  %vm170_vm5 = vcmp.lt.s32.totalorder %v53_v9, 4 }
   0x5   :  { %v32_v6 = vmax.f32 %v26_v3, %v31_v5  ;;  %159 = vperm.xlu2 %293, %v156_v18   ;;  %v298_v24 = vld [vmem:[%s405_s1 + $0x2] ss:$0 sm:$0xff]  ;;  %v283_v42 = vld [vmem:[%s408_s4 + $0x8] sm:$0xff]  ;;  %vm183_vm6 = vcmask 64512   ;;  %v286_v46 = vld [vmem:[%s408_s4 + $0x10] sm:$0xff] }
   0x6   :  { %v70_v27 = vld [vmem:[%s407_s2] sm:$0xff] }
   0x7   :  { %40 = vrot.lane.b32.xlu0 %v32_v6, %s299_s29  ;;  %v256_v43 = vld [vmem:[%s409_s5] sm:$0xff] }
   0x8   :  { %v180_v49 = vld [vmem:[%s408_s4] sm:$0xff] }
   0xf   :  { %46 = vrot.lane.b32.xlu0 %v32_v6, %s300_s30 }
  0x5f   :  { %v160_v32 = vpop.permute.xlu2 %159 }
  0x79   :  { %v41_v7 = vpop.permute.xlu0 %40 }
  0x7a   :  { %v45_v13 = vmul.f32 %v295_v10, %v41_v7 }
  0x81   :  { %v47_v12 = vpop.permute.xlu0 %46 }
  0x82   :  { %v51_v14 = vmul.f32 %v296_v11, %v47_v12 }
  0x84   :  { %v56_v15 = vsel %vm55_vm0, %v45_v13, %v51_v14 }
  0x85   :  { %v57_v16 = vsel %vm54_vm1, %v32_v6, %v56_v15 }
  0x86   :  { %64 = vrot.lane.b32.xlu1 %v57_v16, %s301_s0  ;;  %276 = vmatpush.msk.msra.mxu0 %vm77_vm2, %v57_v16 }
  0x87   :  { %277 = vmatmul.msk.f32.vlgmr.msra.gmra.mxu0 %vm73_vm3, %v275_v17 }
  0x8e   :  { %58 = vrot.lane.b32.xlu1 %v57_v16, %s302_s11 }
  0xf8   :  { %v65_v21 = vpop.permute.xlu1 %64 }
  0xf9   :  { %v69_v22 = vmul.f32 %v297_v20, %v65_v21 }
  0xfb   :  { %281 = vmatpush.msk.msra.mxu2 %vm77_vm2, %v69_v22 }
  0xfc   :  { %282 = vmatmul.msk.f32.vlgmr.msra.gmra.mxu2 %vm73_vm3, %v280_v23 }
 0x100   :  { %v59_v25 = vpop.permute.xlu1 %58 }
 0x101   :  { %v63_v26 = vmul.f32 %v298_v24, %v59_v25 }
 0x103   :  { %278 = vmatpush.msk.msra.mxu1 %vm77_vm2, %v63_v26 }
 0x104   :  { %279 = vmatmul.msk.f32.vlgmr.msra.gmra.mxu1 %vm73_vm3, %v70_v27  ;;  %v98_v28 = vpop.f32.mrf.mxu0 }
 0x17f   :  { %v152_v30 = vpop.f32.mrf.mxu2 }
 0x181   :  { %v124_v29 = vpop.f32.mrf.mxu1 }
 0x182   :  { %v125_v31 = vadd.f32 %v124_v29, %v98_v28 }
 0x184   :  { %v155_v33 = vadd.f32 %v152_v30, %v125_v31 }
 0x186   :  { %v162_v34 = vadd.f32 %v160_v32, %v155_v33 }
 0x188   :  { %v163_v35 = vmax.f32 %v162_v34, 0.0 }
 0x18a   :  { %167 = vrot.lane.b32.xlu0 %v163_v35, %s300_s30  ;;  %164 = vrot.lane.b32.xlu2 %v163_v35, %s299_s29 }
 0x192   :  { %259 = vperm.xlu0 %294, %v256_v43  }
 0x1e4   :  { %v165_v36 = vpop.permute.xlu2 %164 }
 0x1e5   :  { %v166_v38 = vmul.f32 %v295_v10, %v165_v36 }
 0x1fc   :  { %v168_v37 = vpop.permute.xlu0 %167 }
 0x1fd   :  { %v169_v39 = vmul.f32 %v296_v11, %v168_v37 }
 0x1ff   :  { %v172_v40 = vsel %vm171_vm4, %v166_v38, %v169_v39 }
 0x200   :  { %v173_v41 = vsel %vm170_vm5, %v163_v35, %v172_v40 }
 0x201   :  { %177 = vrot.lane.b32.xlu2 %v173_v41, %s301_s0  ;;  %174 = vrot.lane.b32.xlu1 %v173_v41, %s302_s11 }
 0x202   :  { %202 = vmatpush.msra.mxu3 %v173_v41 }
 0x203   :  { %284 = vmatmul.msk.f32.vlgmr.msra.gmra.mxu3 %vm183_vm6, %v283_v42 }
 0x204   :  { %v260_v54 = vpop.permute.xlu0 %259 }
 0x25b   :  { %v178_v44 = vpop.permute.xlu2 %177 }
 0x25c   :  { %v179_v45 = vmul.f32 %v297_v20, %v178_v44 }
 0x25e   :  { %250 = vmatpush.msrb.mxu1 %v179_v45 }
 0x25f   :  { %287 = vmatmul.msk.f32.vlgmr.msrb.gmra.mxu1 %vm183_vm6, %v286_v46 }
 0x273   :  { %v175_v47 = vpop.permute.xlu1 %174 }
 0x274   :  { %v176_v48 = vmul.f32 %v298_v24, %v175_v47 }
 0x276   :  { %225 = vmatpush.msrb.mxu0 %v176_v48 }
 0x277   :  { %285 = vmatmul.msk.f32.vlgmr.msrb.gmra.mxu0 %vm183_vm6, %v180_v49 }
 0x286   :  { %v204_v50 = vpop.f32.mrf.mxu3 }
 0x2dc   :  { %v252_v52 = vpop.f32.mrf.mxu1 }
 0x2f4   :  { %v227_v51 = vpop.f32.mrf.mxu0 }
 0x2f5   :  { %v228_v53 = vadd.f32 %v227_v51, %v204_v50 }
 0x2f7   :  { %v255_v55 = vadd.f32 %v252_v52, %v228_v53 }
 0x2f9   :  { %v262_v56 = vadd.f32 %v260_v54, %v255_v55 }
 0x2fb   :  { %v263_v57 = vmax.f32 %v262_v56, 0.0 }
 0x2fd   :  { %264 = vst [vmem:[%s410_s6] sm:$0xff] %v263_v57 }

</bundles_post_ra>
